<compile_context>
chip_gen: v6e
topology: v6e:2x2x1
jax: 0.10.0
libtpu: 0.0.40
codegen_flags: <defaults>
</compile_context>

<pallas_src>
import jax
import jax.numpy as jnp
from jax.experimental import pallas as pl
from jax.experimental.pallas import tpu as pltpu


# ---------------------------------------------------------------------------
# Hardware-aware helpers
# ---------------------------------------------------------------------------

def _vmem_capacity_bytes():
    """Per-TensorCore VMEM capacity; conservative default if the query fails."""
    try:
        return int(pltpu.get_tpu_info().vmem_capacity_bytes)
    except Exception:
        return 64 << 20          # v7x per-core VMEM (smallest of v5e/v6e/v7x)


def _vmem_limit_bytes(pipeline_bytes, cap):
    headroom = max(cap - (8 << 20), 16 << 20)
    return int(min(max(pipeline_bytes + (2 << 20), 16 << 20), headroom))


def _choose_block_batch(B, slab_bytes, budget):
    """Images per grid step: ~1-2 MiB blocks, >=8 steps when possible, fits budget."""
    bt_by_bytes = max(1, (2 << 20) // max(slab_bytes, 1))
    bt_by_steps = max(1, B // 8)
    bt = int(max(1, min(B, bt_by_bytes, bt_by_steps)))
    while bt > 1 and 4 * bt * slab_bytes > budget:
        bt = max(1, bt // 2)
    return bt


# ---------------------------------------------------------------------------
# Fused single-pass kernel (main path)
# ---------------------------------------------------------------------------

def _make_fused_kernel(C, inv_hw):
    inv_hw = float(inv_hw)

    def kernel(p_ref, x_ref, o_ref, ypad_ref):
        # p_ref (SMEM, f32): [w0, w1, w2, gamma, b]
        # x_ref/o_ref      : (bt, C, HW) activation-dtype block
        # ypad_ref         : (bt, C+2, 1) f32 scratch (zero-padded channel axis)

        # --- global average pool: stream the upcast through the reduce so the
        #     f32 copy of the slab is never materialized/held live in VMEM.
        y = jnp.sum(x_ref[...].astype(jnp.float32), axis=2, keepdims=True) * inv_hw

        # --- Conv1d(1,1,3,pad=1,bias=False) along the channel (sublane) axis.
        #     Only the two edge rows need zeros; rows 1..C are overwritten each
        #     step, so no full scratch re-zero (also megacore-safe: no reliance
        #     on program_id==0 running on every core).
        bt = ypad_ref.shape[0]
        zero_row = jnp.zeros((bt, 1, 1), jnp.float32)
        ypad_ref[:, 0:1, :] = zero_row
        ypad_ref[:, C + 1:C + 2, :] = zero_row
        ypad_ref[:, 1:C + 1, :] = y
        conv = (p_ref[0] * ypad_ref[:, 0:C, :]          # y[c-1] (0 at c=0)
                + p_ref[1] * y
                + p_ref[2] * ypad_ref[:, 2:C + 2, :])   # y[c+1] (0 at c=C-1)

        # --- gate = gamma * sigmoid(conv) + b  (tiny: bt*C elements).
        #     approx=True would push the divide to the EUP, but the conv tensor
        #     is per-channel only, so we keep the exact reciprocal.
        sig = pl.reciprocal(1.0 + jnp.exp(-conv), approx=False)
        gate = p_ref[3] * sig + p_ref[4]

        # --- apply in the activation dtype (bf16 multiply on v6e/v7x); re-read
        #     x from VMEM rather than keeping an f32 copy alive.
        o_ref[...] = x_ref[...] * gate.astype(o_ref.dtype)

    return kernel


# ---------------------------------------------------------------------------
# HW-tiled fallback (huge C*H*W slabs, e.g. v7x 64 MiB VMEM)
# ---------------------------------------------------------------------------

def _eca_hw_tiled(x_flat, params, HW, budget, cap):
    """Pool-then-gate fallback when one image slab exceeds the VMEM budget."""
    B, C, _ = x_flat.shape
    itemsize = jnp.dtype(x_flat.dtype).itemsize
    row_bytes = C * itemsize

    hw_tile = min((2 << 20) // max(row_bytes, 1), max(budget // (4 * row_bytes), 1))
    hw_tile = max(128, (hw_tile // 128) * 128)
    hw_tile = min(hw_tile, ((HW + 127) // 128) * 128)
    n_hw = pl.cdiv(HW, hw_tile)
    need_mask = (HW % hw_tile) != 0
    block_bytes = C * hw_tile * itemsize
    vmem_limit = _vmem_limit_bytes(4 * block_bytes, cap)

    # ---- pass 1: per-(image, channel) spatial sum ---------------------------
    def pool_kernel(x_ref, sum_ref):
        k = pl.program_id(1)

        @pl.when(k == 0)
        def _():
            sum_ref[...] = jnp.zeros_like(sum_ref)

        xv = x_ref[...].astype(jnp.float32)
        if need_mask:
            lane = jax.lax.broadcasted_iota(jnp.int32, xv.shape, 2)
            xv = jnp.where(k * hw_tile + lane < HW, xv, 0.0)
        sum_ref[...] += jnp.sum(xv, axis=2, keepdims=True)

    sums = pl.pallas_call(
        pool_kernel,
        out_shape=jax.ShapeDtypeStruct((B, C, 1), jnp.float32),
        grid_spec=pltpu.PrefetchScalarGridSpec(
            num_scalar_prefetch=0,
            grid=(B, n_hw),
            in_specs=[pl.BlockSpec((1, C, hw_tile), lambda i, k: (i, 0, k))],
            out_specs=pl.BlockSpec((1, C, 1), lambda i, k: (i, 0, 0)),
        ),
        compiler_params=pltpu.CompilerParams(
            dimension_semantics=("parallel", "arbitrary"),
            vmem_limit_bytes=vmem_limit,
        ),
    )(x_flat)

    # ---- middle: tiny (B, C) gate computation in plain JAX ------------------
    w0, w1, w2, gamma, b = (params[i] for i in range(5))
    y = sums[:, :, 0] * (1.0 / HW)                                  # (B, C) f32
    y_pad = jnp.pad(y, ((0, 0), (1, 1)))
    conv = w0 * y_pad[:, :-2] + w1 * y_pad[:, 1:-1] + w2 * y_pad[:, 2:]
    gate = (gamma / (1.0 + jnp.exp(-conv)) + b).astype(x_flat.dtype)[:, :, None]

    # ---- pass 2: apply the per-channel gate ----------------------------------
    def apply_kernel(g_ref, x_ref, o_ref):
        o_ref[...] = x_ref[...] * g_ref[...]

    return pl.pallas_call(
        apply_kernel,
        out_shape=jax.ShapeDtypeStruct((B, C, HW), x_flat.dtype),
        grid_spec=pltpu.PrefetchScalarGridSpec(
            num_scalar_prefetch=0,
            grid=(B, n_hw),
            in_specs=[
                pl.BlockSpec((1, C, 1), lambda i, k: (i, 0, 0)),
                pl.BlockSpec((1, C, hw_tile), lambda i, k: (i, 0, k)),
            ],
            out_specs=pl.BlockSpec((1, C, hw_tile), lambda i, k: (i, 0, k)),
        ),
        compiler_params=pltpu.CompilerParams(
            dimension_semantics=("parallel", "parallel"),
            vmem_limit_bytes=vmem_limit,
        ),
    )(gate, x_flat)


# ---------------------------------------------------------------------------
# Public wrapper
# ---------------------------------------------------------------------------

def eca_forward(x, conv_weight, gamma=2.0, b=1.0, *,
                vmem_pipeline_budget=None, block_batch=None):
    """ECA forward. x: (B, C, H, W); conv_weight: Conv1d(1,1,3,bias=False) taps."""
    B, C, H, W = x.shape
    HW = H * W
    itemsize = jnp.dtype(x.dtype).itemsize
    slab_bytes = C * HW * itemsize                      # one image, one direction

    cap = _vmem_capacity_bytes()
    if vmem_pipeline_budget is None:
        vmem_pipeline_budget = min(24 << 20, cap // 3)

    # Scalar parameters in SMEM -> traced gamma/b do not force recompiles.
    params = jnp.concatenate([
        jnp.asarray(conv_weight, jnp.float32).reshape(3),
        jnp.stack([jnp.asarray(gamma, jnp.float32), jnp.asarray(b, jnp.float32)]),
    ])

    x_flat = x.reshape(B, C, HW)                        # free row-major collapse

    # TODO(synk): add a channels-in-lanes (B, HW, C) variant for tiny-HW stages
    # (HW <= 128) so stores stay fully lane-dense instead of masked.

    if 4 * slab_bytes > vmem_pipeline_budget:
        # Even one image slab does not fit the double-buffered pipeline budget
        # (matters on v7x's 64 MiB VMEM): HW-tiled fallback, ~3x HBM traffic.
        out_flat = _eca_hw_tiled(x_flat, params, HW, vmem_pipeline_budget, cap)
        return out_flat.reshape(B, C, H, W)

    if block_batch is not None:
        bt = int(max(1, min(B, block_batch)))
    else:
        bt = _choose_block_batch(B, slab_bytes, vmem_pipeline_budget)
    grid = (pl.cdiv(B, bt),)                            # tail block masked by Pallas

    vmem_limit = _vmem_limit_bytes(4 * bt * slab_bytes, cap)
    kernel = _make_fused_kernel(C, 1.0 / HW)

    out_flat = pl.pallas_call(
        kernel,
        out_shape=jax.ShapeDtypeStruct((B, C, HW), x.dtype),
        grid_spec=pltpu.PrefetchScalarGridSpec(
            num_scalar_prefetch=0,
            grid=grid,
            in_specs=[
                pl.BlockSpec(memory_space=pltpu.MemorySpace.SMEM),  # [w,gamma,b]
                pl.BlockSpec((bt, C, HW), lambda i: (i, 0, 0)),     # x slab
            ],
            out_specs=pl.BlockSpec((bt, C, HW), lambda i: (i, 0, 0)),
            scratch_shapes=[pltpu.VMEM((bt, C + 2, 1), jnp.float32)],
        ),
        compiler_params=pltpu.CompilerParams(
            dimension_semantics=("parallel",),
            vmem_limit_bytes=vmem_limit,
        ),
    )(params, x_flat)

    return out_flat.reshape(B, C, H, W)


def eca_reference(x, conv_weight, gamma=2.0, b=1.0):
    """Pure-JAX reference mirroring the PyTorch module."""
    w = jnp.asarray(conv_weight, jnp.float32).reshape(3)
    y = jnp.mean(x.astype(jnp.float32), axis=(2, 3))       # (B, C)
    y_pad = jnp.pad(y, ((0, 0), (1, 1)))                   # zero pad along C
    conv = (w[0] * y_pad[:, :-2]
            + w[1] * y_pad[:, 1:-1]
            + w[2] * y_pad[:, 2:])                          # (B, C)
    gate = gamma * jax.nn.sigmoid(conv) + b
    return (x.astype(jnp.float32) * gate[:, :, None, None]).astype(x.dtype)


if __name__ == "__main__":
    key = jax.random.PRNGKey(0)
    kx, kw = jax.random.split(key)

    B, C, H, W = 2, 4, 16, 16
    x = jax.random.normal(kx, (B, C, H, W), dtype=jnp.float32)
    # Conv1d(1, 1, kernel_size=3, bias=False) weight has shape (1, 1, 3).
    conv_weight = jax.random.normal(kw, (1, 1, 3), dtype=jnp.float32) * 0.5

    out = jax.block_until_ready(eca_forward(x, conv_weight, gamma=2.0, b=1.0))
    ref = eca_reference(x, conv_weight, 2.0, 1.0)
    assert out.shape == (B, C, H, W)
    assert jnp.allclose(out, ref, atol=1e-5, rtol=1e-5), "mismatch vs reference"

    # Non-128-multiple spatial size: masked lane stores, no wrapper pad/slice.
    x2 = jax.random.normal(kx, (2, 4, 7, 7), dtype=jnp.float32)
    out2 = jax.block_until_ready(eca_forward(x2, conv_weight))
    ref2 = eca_reference(x2, conv_weight)
    assert jnp.allclose(out2, ref2, atol=1e-5, rtol=1e-5), "mismatch (ragged HW)"

    # bf16 activations: gate multiply runs in the activation dtype.
    x3 = jax.random.normal(kx, (2, 4, 16, 16), dtype=jnp.bfloat16)
    out3 = jax.block_until_ready(eca_forward(x3, conv_weight))
    ref3 = eca_reference(x3, conv_weight)
    assert jnp.allclose(out3.astype(jnp.float32), ref3.astype(jnp.float32),
                        atol=0.1, rtol=0.05), "mismatch (bf16)"

    # Non-divisor batch blocking: grid = cdiv(B, bt) with a masked tail block.
    x4 = jax.random.normal(kx, (5, 4, 8, 8), dtype=jnp.float32)
    out4 = jax.block_until_ready(eca_forward(x4, conv_weight, block_batch=2))
    ref4 = eca_reference(x4, conv_weight)
    assert jnp.allclose(out4, ref4, atol=1e-5, rtol=1e-5), "mismatch (tail block)"

    # Force the HW-tiled fallback (models the v7x huge-slab case).
    x5 = jax.random.normal(kx, (2, 8, 30, 30), dtype=jnp.float32)
    out5 = jax.block_until_ready(
        eca_forward(x5, conv_weight, vmem_pipeline_budget=64 << 10))
    ref5 = eca_reference(x5, conv_weight)
    assert jnp.allclose(out5, ref5, atol=1e-5, rtol=1e-5), "mismatch (HW-tiled)"

    print("KERNEL_OK")
</pallas_src>

<mosaic_0001>
module attributes {stable_mosaic.version = 11 : i64} {
  func.func @kernel(%arg0: i32, %arg1: memref<5xf32, #tpu.memory_space<smem>>, %arg2: memref<1x4x256xf32, #tpu.memory_space<vmem>>, %arg3: memref<1x4x256xf32, #tpu.memory_space<vmem>>, %arg4: memref<1x6x1xf32, #tpu.memory_space<vmem>>) attributes {dimension_semantics = [#tpu.dimension_semantics<parallel>], iteration_bounds = array<i64: 2>, scalar_prefetch = 0 : i64, scratch_operands = 1 : i64, tpu.core_type = #tpu.core_type<tc>, window_params = [{transform_indices = @transform_0, window_bounds = array<i64: 5>}, {transform_indices = @transform_1, window_bounds = array<i64: 1, 4, 256>}, {transform_indices = @transform_2, window_bounds = array<i64: 1, 4, 256>}]} {
    %c0 = arith.constant 0 : index
    %c0_0 = arith.constant 0 : index
    %c0_1 = arith.constant 0 : index
    %0 = vector.load %arg2[%c0, %c0_0, %c0_1] : memref<1x4x256xf32, #tpu.memory_space<vmem>>, vector<1x4x256xf32>
    %cst = arith.constant dense<0.000000e+00> : vector<1x4xf32>
    %1 = vector.multi_reduction <add>, %0, %cst [2] : vector<1x4x256xf32> to vector<1x4xf32>
    %2 = vector.shape_cast %1 : vector<1x4xf32> to vector<1x4x1xf32>
    %cst_2 = arith.constant 3.906250e-03 : f32
    %3 = vector.broadcast %cst_2 : f32 to vector<1x4x1xf32>
    %4 = arith.mulf %2, %3 : vector<1x4x1xf32>
    %cst_3 = arith.constant 0.000000e+00 : f32
    %5 = vector.broadcast %cst_3 : f32 to vector<1x1x1xf32>
    %c0_4 = arith.constant 0 : index
    %c0_5 = arith.constant 0 : index
    %c0_6 = arith.constant 0 : index
    %6 = vector.load %arg4[%c0_4, %c0_5, %c0_6] : memref<1x6x1xf32, #tpu.memory_space<vmem>>, vector<1x1x1xf32>
    tpu.vector_store %arg4[%c0_4, %c0_5, %c0_6], %5 {strides = array<i32>} : memref<1x6x1xf32, #tpu.memory_space<vmem>>, vector<1x1x1xf32>,
    %c0_7 = arith.constant 0 : index
    %c5 = arith.constant 5 : index
    %c0_8 = arith.constant 0 : index
    %7 = vector.load %arg4[%c0_7, %c5, %c0_8] : memref<1x6x1xf32, #tpu.memory_space<vmem>>, vector<1x1x1xf32>
    tpu.vector_store %arg4[%c0_7, %c5, %c0_8], %5 {strides = array<i32>} : memref<1x6x1xf32, #tpu.memory_space<vmem>>, vector<1x1x1xf32>,
    %c0_9 = arith.constant 0 : index
    %c1 = arith.constant 1 : index
    %c0_10 = arith.constant 0 : index
    %8 = vector.load %arg4[%c0_9, %c1, %c0_10] : memref<1x6x1xf32, #tpu.memory_space<vmem>>, vector<1x4x1xf32>
    tpu.vector_store %arg4[%c0_9, %c1, %c0_10], %4 {strides = array<i32>} : memref<1x6x1xf32, #tpu.memory_space<vmem>>, vector<1x4x1xf32>,
    %c0_11 = arith.constant 0 : index
    %9 = memref.load %arg1[%c0_11] : memref<5xf32, #tpu.memory_space<smem>>
    %c0_12 = arith.constant 0 : index
    %c0_13 = arith.constant 0 : index
    %c0_14 = arith.constant 0 : index
    %10 = vector.load %arg4[%c0_12, %c0_13, %c0_14] : memref<1x6x1xf32, #tpu.memory_space<vmem>>, vector<1x4x1xf32>
    %11 = vector.broadcast %9 : f32 to vector<1x4x1xf32>
    %12 = arith.mulf %11, %10 : vector<1x4x1xf32>
    %c1_15 = arith.constant 1 : index
    %13 = memref.load %arg1[%c1_15] : memref<5xf32, #tpu.memory_space<smem>>
    %14 = vector.broadcast %13 : f32 to vector<1x4x1xf32>
    %15 = arith.mulf %14, %4 : vector<1x4x1xf32>
    %16 = arith.addf %12, %15 : vector<1x4x1xf32>
    %c2 = arith.constant 2 : index
    %17 = memref.load %arg1[%c2] : memref<5xf32, #tpu.memory_space<smem>>
    %c0_16 = arith.constant 0 : index
    %c2_17 = arith.constant 2 : index
    %c0_18 = arith.constant 0 : index
    %18 = vector.load %arg4[%c0_16, %c2_17, %c0_18] : memref<1x6x1xf32, #tpu.memory_space<vmem>>, vector<1x4x1xf32>
    %19 = vector.broadcast %17 : f32 to vector<1x4x1xf32>
    %20 = arith.mulf %19, %18 : vector<1x4x1xf32>
    %21 = arith.addf %16, %20 : vector<1x4x1xf32>
    %cst_19 = arith.constant 0.000000e+00 : f32
    %22 = vector.broadcast %cst_19 : f32 to vector<1x4x1xf32>
    %23 = arith.subf %22, %21 : vector<1x4x1xf32>
    %24 = math.exp %23 : vector<1x4x1xf32>
    %cst_20 = arith.constant 1.000000e+00 : f32
    %25 = vector.broadcast %cst_20 : f32 to vector<1x4x1xf32>
    %26 = arith.addf %25, %24 : vector<1x4x1xf32>
    %27 = tpu.reciprocal %26 : vector<1x4x1xf32> -> vector<1x4x1xf32>
    %c3 = arith.constant 3 : index
    %28 = memref.load %arg1[%c3] : memref<5xf32, #tpu.memory_space<smem>>
    %29 = vector.broadcast %28 : f32 to vector<1x4x1xf32>
    %30 = arith.mulf %29, %27 : vector<1x4x1xf32>
    %c4 = arith.constant 4 : index
    %31 = memref.load %arg1[%c4] : memref<5xf32, #tpu.memory_space<smem>>
    %32 = vector.broadcast %31 : f32 to vector<1x4x1xf32>
    %33 = arith.addf %30, %32 : vector<1x4x1xf32>
    %c0_21 = arith.constant 0 : index
    %c0_22 = arith.constant 0 : index
    %c0_23 = arith.constant 0 : index
    %34 = vector.load %arg2[%c0_21, %c0_22, %c0_23] : memref<1x4x256xf32, #tpu.memory_space<vmem>>, vector<1x4x256xf32>
    %35 = vector.broadcast %33 : vector<1x4x1xf32> to vector<1x4x256xf32>
    %36 = arith.mulf %34, %35 : vector<1x4x256xf32>
    %c0_24 = arith.constant 0 : index
    %c0_25 = arith.constant 0 : index
    %c0_26 = arith.constant 0 : index
    %37 = vector.load %arg3[%c0_24, %c0_25, %c0_26] : memref<1x4x256xf32, #tpu.memory_space<vmem>>, vector<1x4x256xf32>
    tpu.vector_store %arg3[%c0_24, %c0_25, %c0_26], %36 {strides = array<i32>} : memref<1x4x256xf32, #tpu.memory_space<vmem>>, vector<1x4x256xf32>,
    return
  }
  func.func @transform_0(%arg0: i32) -> i32 {
    %c0_i32 = arith.constant 0 : i32
    %c0_i32_0 = arith.constant 0 : i32
    return %c0_i32 : i32
  }
  func.func @transform_1(%arg0: i32) -> (i32, i32, i32) {
    %c0_i32 = arith.constant 0 : i32
    %c0_i32_0 = arith.constant 0 : i32
    %c0_i32_1 = arith.constant 0 : i32
    return %arg0, %c0_i32, %c0_i32_0 : i32, i32, i32
  }
  func.func @transform_2(%arg0: i32) -> (i32, i32, i32) {
    %c0_i32 = arith.constant 0 : i32
    %c0_i32_0 = arith.constant 0 : i32
    %c0_i32_1 = arith.constant 0 : i32
    return %arg0, %c0_i32, %c0_i32_0 : i32, i32, i32
  }
}

</mosaic_0001>

<bundles_post_ra>
// kernel: tpu_custom_call.1
= control target key start
LH: loop header
LB: loop body
LE: loop exit
PB: predicated region body
PF: predicated region fallthrough
CT: control target
= control target key end

     0   :  { %7 = vsyncpa [#allocation6], 0  ;;  %s692_s0 = inlined_call_operand.hbm [shape: f32[5], index: 0, kind: input, shape index: {}]   ;;  %s693_s1 = inlined_call_operand.hbm [shape: f32[2,4,256], index: 1, kind: input, shape index: {}]   ;;  %s694_s2 = inlined_call_operand.hbm [shape: f32[2,4,256], index: 2, kind: output, shape index: {}]  }
   0x1   :  { %8 = vsyncpa [#allocation4], 0 }
   0x2   :  { %10 = vsyncpa [#allocation4 + $0x1], 0 }
   0x3   :  { %11 = vsyncpa [#allocation5], 0 }
   0x4   :  { %13 = vsyncpa [#allocation5 + $0x1], 0  ;;  %s542_s9 = smov 0   ;;  %s544_s10 = smov 0  }
   0x5   :  { %s546_s11 = smov 0   ;;  %s548_s12 = smov 0  }
   0x6 LB: > { %s563_s13 = sadd.s32 4294967295, %s519_s12   ;;  %s324_s14 = sadd.s32 4294967294, %s519_s12   ;;  %s519_s12 = sphi %s548_s12, %s714_s12   ;;  %s515_s11 = sphi %s546_s11, %s713_s11   ;;  %s511_s10 = sphi %s544_s10, %s712_s10   ;;  %s507_s9 = sphi %s542_s9, %s711_s9  }
   0x7   : > { %p60_p0 = scmp.ne.s32.totalorder %s511_s10, %s507_s9  ;;  %p695_p1 = scmp.eq.s32.totalorder %s563_s13, 0 }
   0x8   : > { %p84_p2 = scmp.eq.s32.totalorder %s563_s13, 1  ;;  %p90_p3 = scmp.eq.s32.totalorder %s324_s14, 1 }
   0x9   : > { %p572_p4 = por %p695_p1, %p60_p0  ;;  %p325_p5 = scmp.ge.s32.totalorder %s519_s12, 1 }
   0xa   : > { %p577_p6 = por %p90_p3, %p60_p0  ;;  %p97_p7 = scmp.lt.s32.totalorder %s519_s12, 3 }
   0xb   : > { %s699_s15 = scalar_select %p572_p4, 1, 0 }
   0xc   : > { %s700_s16 = scalar_select %p577_p6, 1, 0 }
   0xd   : > { %p582_p8 = pnand %p325_p5, %p97_p7  ;;  %s588_s18 = sadd.s32 1, %s519_s12  }
   0xe   : > { %s44_s19 = ssub.s32 %s519_s12, %s588_s18  ;;  %s47_s20 = sadd.s32 1, %s515_s11 }
   0xf   : > { %s701_s17 = scalar_select %p582_p8, 1, 0 }
  0x10   : > { %p354_p10 = pneg %p582_p8  ;;  %p45_p12 = scmp.eq.s32.totalorder %s44_s19, 0 }
  0x11   : > { %p54_p13 = scmp.ne.s32.totalorder %s515_s11, %s511_s10  ;;  %p55_p0 = scmp.eq.s32.totalorder %s519_s12, 0 }
  0x12   : > { %p355_p11 = pnand %p354_p10, %p695_p1  ;;  %p367_p3 = scmp.lt.s32.totalorder %s519_s12, 2 }
  0x13   : > { %s521_s21 = smov [#allocation3]   ;;  %p56_p5 = por %p55_p0, %p54_p13 }
  0x14   : > { %357 = dma.hbm_to_smem (!%p355_p11), %s692_s0, 16, %s521_s21, [#allocation6]  }
  0x15   : > { %s605_s24 = scalar_select %p45_p12, %s515_s11, %s47_s20  }
  0x16   : > { %p609_p7 = por %p84_p2, %p54_p13  ;;  %s119_s26 = sand.u32 1, %s515_s11  }
  0x17   : > { %s344_s27 = sshll.u32 %s519_s12, 7  ;;  %s328_s28 = sshll.u32 %s119_s26, 3 }
  0x18   : > { %s702_s25 = scalar_select %p609_p7, 1, 0 }
  0x19   : > { %s618_s3 = scalar_lea.hbm %s693_s1, %s344_s27  ;;  %s123_s4 = scalar_lea.vmem [#allocation7], %s328_s28 }
  0x1a   : > { %s131_s5 = sshll.u32 %s123_s4, 4  ;;  %p620_p10 = pnand %p367_p3, %p56_p5  ;;  %s132_s5 = int_to_ptr.vmem [resolvable:$true] %s131_s5 }
  0x1b   : > { %s120_s7 = scalar_lea.sflag [#allocation4], %s119_s26  ;;  %s423_s8 = scalar_lea.hbm %s618_s3, 128 }
  0x1c   : > { %p424_p2 = scmp.ne.s32.totalorder %s618_s3, %s423_s8  ;;  %p425_p11 = pneg %p620_p10 }
  0x1d   : > { %s428_s20 = scalar_lea.hbm %s693_s1, 256  ;;  %p429_p0 = scmp.lt.s32.totalorder %s618_s3, %s693_s1 }
  0x1e   : > { %p426_p12 = pnand %p425_p11, %p424_p2  ;;  %p430_p3 = scmp.lt.s32.totalorder %s428_s20, %s423_s8 }
  0x20   : > { %p427_p13 = pneg %p426_p12  ;;  %p431_p5 = por %p430_p3, %p429_p0 }
  0x22   : > { %p432_p9 = pnand %p431_p5, %p427_p13 }
  0x24   : > { %435 = shalt.err (!%p432_p9)
}
  0x25   : > { %s436_s23 = scalar_lea.vmem %s132_s5, 128  ;;  %s522_s26 = smov [#allocation7]  }
  0x26   : > { %p437_p1 = scmp.ne.s32.totalorder %s132_s5, %s436_s23  ;;  %s441_s27 = sshll.u32 %s522_s26, 4  ;;  %s442_s27 = int_to_ptr.vmem [resolvable:$false] %s441_s27 }
  0x27   : > { %s443_s28 = scalar_lea.vmem %s442_s27, 256  ;;  %p444_p2 = scmp.lt.s32.totalorder %s132_s5, %s442_s27 }
  0x28   : > { %p439_p6 = pnand %p437_p1, %p425_p11  ;;  %p445_p12 = scmp.lt.s32.totalorder %s443_s28, %s436_s23 }
  0x2a   : > { %p440_p7 = pneg %p439_p6  ;;  %p446_p4 = por %p445_p12, %p444_p2 }
  0x2c   : > { %p447_p8 = pnand %p446_p4, %p440_p7 }
  0x2e   : > { %450 = shalt.err (!%p447_p8)
}
  0x2f   : > { %361 = dma.hbm_to_vmem [thread:$0]  (!%p620_p10), %s618_s3, 128, %s132_s5, %s120_s7  }
  0x30   : > { %p704_p13 = scmp.ne.s32.totalorder %s701_s17, 0 }
  0x31   : > { %p705_p9 = scmp.eq.s32.totalorder (!%p704_p13), %s563_s13, 0 }
  0x32   : > { %140 = sbr.rel (%p704_p13) target bundleno = 401 (0x191), region = 28 }
  0x37   : > { %494 = dma.done.wait (%p705_p9), [#allocation6], 16   ;;  %p706_p1 = pmov %p705_p9 }
  0x38   : > { %s645_s29 = sand.u32 1, %s511_s10   ;;  %p707_p4 = scmp.ne.s32.totalorder %s699_s15, 0 }
  0x39   : > { %496 = vsyncadd (%p706_p1), [#allocation6], 4294967280  ;;  %s333_s30 = sshll.u32 %s645_s29, 3  ;;  %s147_s4 = scalar_lea.sflag [#allocation4], %s645_s29 }
  0x3a   : > { %s150_s3 = scalar_lea.vmem [#allocation7], %s333_s30 }
  0x3b   : > { %498 = dma.done.wait (%p707_p4), %s147_s4, 128  }
  0x3c   : > { %500 = vsyncadd (%p707_p4), %s147_s4, 4294967168 }
  0x3d   : > { %155 = sfence }
  0x3e   : > { %v172_v0 = vld [vmem:[%s150_s3] sm:$0xff]  ;;  %vm176_vm0 = vcmask 1043456   ;;  %vm183_vm1 = vcmask 0   ;;  %v523_v3 = vmov 0.0   ;;  %v524_v6 = vmov 0   ;;  %s188_s17 = sld [smem:[#allocation3]] }
  0x3f   : > { %v174_v1 = vcombine.high %v172_v0, %v172_v0  ;;  %v177_v2 = vsel %vm176_vm0, %v172_v0, 0.0  ;;  %184 = vst.msk [vmem:[#allocation2] sm:$0x1] %vm183_vm1, %v523_v3  ;;  %185 = vst.msk [vmem:[#allocation2 + $0x5] sm:$0x1] %vm183_vm1, %v523_v3  ;;  %406 = vset.pattern.permute.xlu0 %v524_v6  ;;  %vm186_vm2 = vcmask 3072   ;;  %v220_v30 = vlaneseq }
  0x40   : > { %s335_s5 = sld [smem:[#allocation3 + $0x1]]  ;;  %v525_v28 = vmov 839922192   ;;  %s345_s8 = sshll.u32 %s563_s13, 7 }
  0x41   : > { %v178_v4 = vsel %vm176_vm0, %v174_v1, 0.0  ;;  %s336_s15 = sld [smem:[#allocation3 + $0x2]]  ;;  %v218_v29 = vunpack.c.l.s4 %v525_v28  ;;  %v221_v32 = vshrl.u32 %v220_v30, 7  ;;  %s171_s14 = scalar_lea.vmem [#allocation8], %s333_s30 }
  0x42   : > { %v179_v5 = vadd.f32 %v178_v4, %v177_v2  ;;  %s337_s6 = sld [smem:[#allocation3 + $0x3]]  ;;  %s242_s19 = sshll.u32 %s171_s14, 4  ;;  %s243_s19 = int_to_ptr.vmem [resolvable:$true] %s242_s19 }
  0x43   : > { %s338_s7 = sld [smem:[#allocation3 + $0x4]]  ;;  %v219_v31 = vunpack.c.0.s8 %v218_v29  ;;  %s240_s22 = scalar_lea.hbm %s694_s2, %s345_s8 }
  0x44   : > { %180 = vadd.xlane.f32.xlu0 %v179_v5  ;;  %v190_v9 = vstv %s188_s17  ;;  %s228_s23 = scalar_lea.sflag [#allocation5], %s645_s29  ;;  %s451_s26 = scalar_lea.vmem %s243_s19, 128 }
  0x45   : > { %v222_v33 = vsub.s32 %v219_v31, %v221_v32  ;;  %p452_p6 = scmp.ne.s32.totalorder %s243_s19, %s451_s26  ;;  %p708_p8 = scmp.ne.s32.totalorder %s702_s25, 0 }
  0x46   : > { %v193_v10 = vstv %s335_s5  ;;  %s526_s27 = smov [#allocation8]  }
  0x47   : > { %v198_v11 = vstv %s336_s15  ;;  %p453_p7 = pnand %p452_p6, %p708_p8  ;;  %s455_s28 = sshll.u32 %s526_s27, 4  ;;  %s456_s28 = int_to_ptr.vmem [resolvable:$false] %s455_s28 }
  0x48   : > { %v207_v23 = vstv %s337_s6  ;;  %s457_s13 = scalar_lea.vmem %s456_s28, 256  ;;  %p458_p11 = scmp.lt.s32.totalorder %s243_s19, %s456_s28 }
  0x49   : > { %v210_v25 = vstv %s338_s7  ;;  %p454_p10 = pneg %p453_p7  ;;  %p459_p0 = scmp.lt.s32.totalorder %s457_s13, %s451_s26 }
  0x4b   : > { %p460_p3 = por %p459_p0, %p458_p11 }
  0x4d   : > { %p461_p5 = pnand %p460_p3, %p454_p10 }
  0xcd   : > { %v181_v7 = vpop.xlane.xlu0 %180 }
  0xce   : > { %v182_v8 = vmul.f32 0.00390625, %v181_v7 }
  0xd0   : > { %187 = vst.msk [vmem:[#allocation2 + $0x1] sm:$0xf] %vm186_vm2, %v182_v8  ;;  %v194_v15 = vmul.f32 %v193_v10, %v182_v8 }
  0xd7   : > { %v189_v12 = vld [vmem:[#allocation2] sm:$0xf] }
  0xd8   : > { %v197_v13 = vld [vmem:[#allocation2 + $0x2] sm:$0xf]  ;;  %v191_v14 = vmul.f32 %v190_v9, %v189_v12 }
  0xd9   : > { %v199_v17 = vmul.f32 %v198_v11, %v197_v13 }
  0xda   : > { %v195_v16 = vadd.f32 %v194_v15, %v191_v14 }
  0xdc   : > { %v200_v18 = vadd.f32 %v199_v17, %v195_v16 }
  0xde   : > { %v201_v19 = vsub.f32 0.0, %v200_v18 }
  0xe0   : > { %v202_v20 = vmul.f32 1.442695, %v201_v19 }
  0xe2   : > { %408 = vpow2.f32 %v202_v20 }
  0xef   : > { %v409_v21 = vpop.eup %408 }
  0xf0   : > { %v204_v22 = vadd.f32 1.0, %v409_v21 }
  0xf2   : > { %410 = vrcp.f32 %v204_v22 }
  0xff   : > { %v411_v24 = vpop.eup %410 }
 0x100   : > { %v208_v26 = vmul.f32 %v411_v24, %v207_v23 }
 0x102   : > { %v211_v27 = vadd.f32 %v210_v25, %v208_v26 }
 0x104   : > { %215 = vperm.xlu0 %406, %v211_v27  }
 0x17f   : > { %v216_v34 = vpop.permute.xlu0 %215 }
 0x180   : > { %v223_v35 = vrot.slane %v216_v34, %v222_v33 }
 0x182   : > { %v225_v36 = vmul.f32 %v223_v35, %v172_v0 }
 0x184   : > { %226 = vst [vmem:[%s171_s14] sm:$0xff] %v225_v36 }
 0x185   : > { %464 = shalt.err (!%p461_p5)
}
 0x186   : > { %s465_s30 = scalar_lea.hbm %s240_s22, 128  ;;  %s469_s3 = scalar_lea.hbm %s694_s2, 256 }
 0x187   : > { %p466_p2 = scmp.ne.s32.totalorder %s240_s22, %s465_s30  ;;  %p470_p9 = scmp.lt.s32.totalorder %s240_s22, %s694_s2 }
 0x188   : > { %p471_p1 = scmp.lt.s32.totalorder %s469_s3, %s465_s30 }
 0x189   : > { %p467_p12 = pnand %p466_p2, %p708_p8 }
 0x18a   : > { %p472_p4 = por %p471_p1, %p470_p9 }
 0x18b   : > { %p468_p13 = pneg %p467_p12 }
 0x18d   : > { %p473_p6 = pnand %p472_p4, %p468_p13 }
 0x18f   : > { %476 = shalt.err (!%p473_p6)
}
 0x190   : > { %352 = dma.vmem_to_hbm [thread:$0]  (%p708_p8), %s243_s19, 128, %s240_s22, %s228_s23  }
 0x191 PF: > { %s254_s15 = sand.u32 1, %s507_s9   ;;  %p709_p7 = scmp.ne.s32.totalorder %s700_s16, 0 }
 0x192   : > { %p710_p10 = scmp.ge.s32.totalorder %s519_s12, 2  ;;  %s255_s6 = scalar_lea.sflag [#allocation5], %s254_s15 }
 0x194   : > { %p363_p11 = pnand %p710_p10, %p709_p7 }
 0x196   : > { %p364_p0 = pneg %p363_p11 }
 0x198   : > { %502 = dma.done.wait (%p364_p0), %s255_s6, 128  }
 0x199   : > { %504 = vsyncadd (%p364_p0), %s255_s6, 4294967168  ;;  %p16_p3 = scmp.ge.s32.totalorder %s588_s18, 4   ;;  %s711_s9 = smov %s511_s10 }
 0x19a   : > { %s712_s10 = smov %s515_s11  ;;  %s713_s11 = smov %s605_s24 }
 0x19b   : > { %s714_s12 = smov %s588_s18  ;;  %18 = sbr.rel (!%p16_p3) target bundleno = 6 (0x6), region = 78 }
 0x1a0   :  { %260 = vsyncpa [#allocation4], 1 }
 0x1a1   :  { %262 = vsyncpa [#allocation4 + $0x1], 1 }
 0x1a2   :  { %263 = vsyncpa [#allocation5], 1 }
 0x1a3   :  { %265 = vsyncpa [#allocation5 + $0x1], 1 }
 0x1a4   :  { %266 = vsyncpa [#allocation6], 1 }
 0x1a5   :  { %268 = vsyncpa [#allocation6 + $0x1], 1 }

</bundles_post_ra>
